<compile_context>
chip_gen: v6e
topology: v6e:2x2x1
jax: 0.10.0
libtpu: 0.0.40
codegen_flags: <defaults>
</compile_context>

<pallas_src>
import functools

import jax
import jax.numpy as jnp
from jax.experimental import pallas as pl
from jax.experimental.pallas import tpu as pltpu

LANES = 128


def _adaptive_loss_kernel(logits_ref, labels_ref, out_ref, acc_ref, *,
                          n, alpha, beta, target_fpr, target_fnr):
    pid = pl.program_id(0)

    @pl.when(pid == 0)
    def _init():
        acc_ref[0] = jnp.float32(0.0)   # sum of per-row cross entropy
        acc_ref[1] = jnp.float32(0.0)   # FP count
        acc_ref[2] = jnp.float32(0.0)   # FN count
        acc_ref[3] = jnp.float32(0.0)   # count of label == 1

    # Lane-dense tiles: (rows, 128) with the batch axis on lanes.
    l0 = logits_ref[0].astype(jnp.float32)
    l1 = logits_ref[1].astype(jnp.float32)
    lab = labels_ref[...]                      # (rows, 128) int32

    rows, lanes = l0.shape
    row_iota = jax.lax.broadcasted_iota(jnp.int32, (rows, lanes), 0)
    lane_iota = jax.lax.broadcasted_iota(jnp.int32, (rows, lanes), 1)
    idx = (pid * rows + row_iota) * lanes + lane_iota
    valid = idx < n                            # mask out padded rows
    validf = valid.astype(jnp.float32)

    one = jnp.float32(1.0)
    zero = jnp.float32(0.0)

    # Numerically stable binary logsumexp (no onehot / softmax / divide).
    mx = jnp.maximum(l0, l1)
    lse = mx + jnp.log(one + jnp.exp(-jnp.abs(l1 - l0)))

    lab1 = lab == 1
    lab0 = lab == 0
    picked = jnp.where(lab1, l1, l0)           # assumes labels in {0, 1}
    ce_row = (lse - picked) * validf

    preds = l1 >= l0                           # == (softmax prob of class 1 >= 0.5)
    fp_row = jnp.where(preds & lab0 & valid, one, zero)
    fn_row = jnp.where(jnp.logical_not(preds) & lab1 & valid, one, zero)
    n1_row = jnp.where(lab1 & valid, one, zero)

    acc_ref[0] = acc_ref[0] + jnp.sum(ce_row)
    acc_ref[1] = acc_ref[1] + jnp.sum(fp_row)
    acc_ref[2] = acc_ref[2] + jnp.sum(fn_row)
    acc_ref[3] = acc_ref[3] + jnp.sum(n1_row)

    @pl.when(pid == pl.num_programs(0) - 1)
    def _finalize():
        nf = jnp.float32(n)
        ce = acc_ref[0] / nf                   # mean-reduced cross entropy
        fp = acc_ref[1]
        fn = acc_ref[2]
        n1 = acc_ref[3]
        tn = (nf - n1) - fp
        tp = n1 - fn
        eps = jnp.float32(1e-8)
        cur_fpr = fp / (fp + tn + eps)
        cur_fnr = fn / (fn + tp + eps)
        fpr_pen = jnp.float32(alpha) * jnp.maximum(cur_fpr - jnp.float32(target_fpr), zero)
        fnr_pen = jnp.float32(beta) * jnp.maximum(cur_fnr - jnp.float32(target_fnr), zero)
        out_ref[0, 0] = ce + fpr_pen + fnr_pen


def adaptive_fpr_fnr_controlled_loss(outputs, labels, *,
                                     alpha=1.0, beta=1.0,
                                     target_fpr=0.01, target_fnr=0.01,
                                     rows_per_block=512):
    """outputs: (N, 2) float logits (f32 or bf16); labels: (N,) ints in {0,1}.

    Returns the scalar total loss (f32): CE(mean) + alpha*relu(FPR - target_fpr)
                                                   + beta *relu(FNR - target_fnr).
    """
    n, c = outputs.shape
    assert c == 2, "AdaptiveFPRFNRControlledLoss assumes binary logits (C == 2)."

    # Lane-dense tiling: batch axis on lanes, 8-sublane-aligned row blocks.
    rows_needed = -(-n // LANES)
    rows_per_block = min(int(rows_per_block), ((rows_needed + 7) // 8) * 8)
    num_blocks = -(-rows_needed // rows_per_block)
    padded_rows = num_blocks * rows_per_block
    padded_n = padded_rows * LANES

    # Keep the original logit dtype (cast to f32 inside the kernel); only
    # layout plumbing happens here.
    logits_t = outputs.T                        # (2, N), batch on the fast axis
    labels_i = labels.astype(jnp.int32)
    pad = padded_n - n
    if pad:
        logits_t = jnp.pad(logits_t, ((0, 0), (0, pad)))
        labels_i = jnp.pad(labels_i, (0, pad))
    logits_t = logits_t.reshape(2, padded_rows, LANES)
    labels_i = labels_i.reshape(padded_rows, LANES)

    kernel = functools.partial(
        _adaptive_loss_kernel,
        n=n,
        alpha=float(alpha), beta=float(beta),
        target_fpr=float(target_fpr), target_fnr=float(target_fnr))

    out = pl.pallas_call(
        kernel,
        out_shape=jax.ShapeDtypeStruct((1, 1), jnp.float32),
        grid_spec=pltpu.PrefetchScalarGridSpec(
            num_scalar_prefetch=0,
            grid=(num_blocks,),
            in_specs=[
                pl.BlockSpec((2, rows_per_block, LANES), lambda i: (0, i, 0)),
                pl.BlockSpec((rows_per_block, LANES), lambda i: (i, 0)),
            ],
            out_specs=pl.BlockSpec(memory_space=pltpu.MemorySpace.SMEM),
            scratch_shapes=[pltpu.SMEM((4,), jnp.float32)],
        ),
        compiler_params=pltpu.CompilerParams(
            dimension_semantics=("arbitrary",),
            vmem_limit_bytes=32 * 1024 * 1024,
        ),
    )(logits_t, labels_i)
    return out[0, 0]


def _reference(outputs, labels, alpha=1.0, beta=1.0, target_fpr=0.01, target_fnr=0.01):
    # Pure-JAX reference mirroring the PyTorch forward.
    logp = jax.nn.log_softmax(outputs.astype(jnp.float32), axis=1)
    ce = -jnp.mean(jnp.take_along_axis(logp, labels[:, None], axis=1))
    probs = jax.nn.softmax(outputs.astype(jnp.float32), axis=1)
    preds = probs[:, 1] >= 0.5
    fp = jnp.sum((preds & (labels == 0)).astype(jnp.float32))
    tn = jnp.sum(((~preds) & (labels == 0)).astype(jnp.float32))
    fn = jnp.sum(((~preds) & (labels == 1)).astype(jnp.float32))
    tp = jnp.sum((preds & (labels == 1)).astype(jnp.float32))
    fpr = fp / (fp + tn + 1e-8)
    fnr = fn / (fn + tp + 1e-8)
    return ce + alpha * jnp.clip(fpr - target_fpr, 0.0) + beta * jnp.clip(fnr - target_fnr, 0.0)


if __name__ == "__main__":
    key = jax.random.PRNGKey(0)
    k1, k2 = jax.random.split(key)

    # Binary-classification logits, as the module's forward implies.
    N, C = 2000, 2
    outputs = jax.random.normal(k1, (N, C), dtype=jnp.float32)
    labels = jax.random.randint(k2, (N,), 0, 2, dtype=jnp.int32)

    ref = _reference(outputs, labels)

    # Default tiling (single block for this N) — exercises remainder masking.
    loss1 = adaptive_fpr_fnr_controlled_loss(
        outputs, labels, alpha=1.0, beta=1.0, target_fpr=0.01, target_fnr=0.01)
    loss1 = jax.block_until_ready(loss1)
    assert jnp.allclose(loss1, ref, rtol=1e-4, atol=1e-4), (loss1, ref)

    # Small tiles — exercises the multi-step grid + SMEM accumulators.
    loss2 = adaptive_fpr_fnr_controlled_loss(
        outputs, labels, alpha=1.0, beta=1.0, target_fpr=0.01, target_fnr=0.01,
        rows_per_block=8)
    loss2 = jax.block_until_ready(loss2)
    assert jnp.allclose(loss2, ref, rtol=1e-4, atol=1e-4), (loss2, ref)

    print("KERNEL_OK")
</pallas_src>

<mosaic_0001>
module attributes {stable_mosaic.version = 11 : i64} {
  func.func @_adaptive_loss_kernel(%arg0: i32, %arg1: memref<2x16x128xf32, #tpu.memory_space<vmem>>, %arg2: memref<16x128xi32, #tpu.memory_space<vmem>>, %arg3: memref<1x1xf32, #tpu.memory_space<smem>>, %arg4: memref<4xf32, #tpu.memory_space<smem>>) attributes {dimension_semantics = [#tpu.dimension_semantics<arbitrary>], iteration_bounds = array<i64: 1>, scalar_prefetch = 0 : i64, scratch_operands = 1 : i64, tpu.core_type = #tpu.core_type<tc>, window_params = [{transform_indices = @transform_0, window_bounds = array<i64: 2, 16, 128>}, {transform_indices = @transform_1, window_bounds = array<i64: 16, 128>}, {transform_indices = @transform_2, window_bounds = array<i64: 1, 1>}]} {
    %c0_i32 = arith.constant 0 : i32
    %0 = arith.cmpi eq, %arg0, %c0_i32 : i32
    %1 = arith.extui %0 : i1 to i32
    %c0_i32_0 = arith.constant 0 : i32
    %2 = arith.cmpi ne, %1, %c0_i32_0 : i32
    scf.if %2 {
      %cst_29 = arith.constant 0.000000e+00 : f32
      %c0_30 = arith.constant 0 : index
      %84 = memref.load %arg4[%c0_30] : memref<4xf32, #tpu.memory_space<smem>>
      memref.store %cst_29, %arg4[%c0_30] : memref<4xf32, #tpu.memory_space<smem>>
      %cst_31 = arith.constant 0.000000e+00 : f32
      %c1_32 = arith.constant 1 : index
      %85 = memref.load %arg4[%c1_32] : memref<4xf32, #tpu.memory_space<smem>>
      memref.store %cst_31, %arg4[%c1_32] : memref<4xf32, #tpu.memory_space<smem>>
      %cst_33 = arith.constant 0.000000e+00 : f32
      %c2_34 = arith.constant 2 : index
      %86 = memref.load %arg4[%c2_34] : memref<4xf32, #tpu.memory_space<smem>>
      memref.store %cst_33, %arg4[%c2_34] : memref<4xf32, #tpu.memory_space<smem>>
      %cst_35 = arith.constant 0.000000e+00 : f32
      %c3_36 = arith.constant 3 : index
      %87 = memref.load %arg4[%c3_36] : memref<4xf32, #tpu.memory_space<smem>>
      memref.store %cst_35, %arg4[%c3_36] : memref<4xf32, #tpu.memory_space<smem>>
    } else {
    }
    %c0 = arith.constant 0 : index
    %c0_1 = arith.constant 0 : index
    %c0_2 = arith.constant 0 : index
    %3 = vector.load %arg1[%c0, %c0_1, %c0_2] : memref<2x16x128xf32, #tpu.memory_space<vmem>>, vector<1x16x128xf32>
    %4 = vector.shape_cast %3 : vector<1x16x128xf32> to vector<16x128xf32>
    %c1 = arith.constant 1 : index
    %c0_3 = arith.constant 0 : index
    %c0_4 = arith.constant 0 : index
    %5 = vector.load %arg1[%c1, %c0_3, %c0_4] : memref<2x16x128xf32, #tpu.memory_space<vmem>>, vector<1x16x128xf32>
    %6 = vector.shape_cast %5 : vector<1x16x128xf32> to vector<16x128xf32>
    %c0_5 = arith.constant 0 : index
    %c0_6 = arith.constant 0 : index
    %7 = vector.load %arg2[%c0_5, %c0_6] : memref<16x128xi32, #tpu.memory_space<vmem>>, vector<16x128xi32>
    %8 = tpu.iota {dimensions = array<i32: 0>} : vector<16x128xi32>
    %9 = tpu.iota {dimensions = array<i32: 1>} : vector<16x128xi32>
    %c16_i32 = arith.constant 16 : i32
    %10 = arith.muli %arg0, %c16_i32 : i32
    %11 = vector.broadcast %10 : i32 to vector<16x128xi32>
    %12 = arith.addi %11, %8 : vector<16x128xi32>
    %c128_i32 = arith.constant 128 : i32
    %13 = vector.broadcast %c128_i32 : i32 to vector<16x128xi32>
    %14 = arith.muli %12, %13 : vector<16x128xi32>
    %15 = arith.addi %14, %9 : vector<16x128xi32>
    %c2000_i32 = arith.constant 2000 : i32
    %16 = vector.broadcast %c2000_i32 : i32 to vector<16x128xi32>
    %17 = arith.cmpi slt, %15, %16 : vector<16x128xi32>
    %18 = arith.extui %17 : vector<16x128xi1> to vector<16x128xi32>
    %19 = arith.sitofp %18 : vector<16x128xi32> to vector<16x128xf32>
    %20 = arith.maximumf %4, %6 : vector<16x128xf32>
    %21 = arith.subf %6, %4 : vector<16x128xf32>
    %22 = math.absf %21 : vector<16x128xf32>
    %cst = arith.constant 0.000000e+00 : f32
    %23 = vector.broadcast %cst : f32 to vector<16x128xf32>
    %24 = arith.subf %23, %22 : vector<16x128xf32>
    %25 = math.exp %24 : vector<16x128xf32>
    %cst_7 = arith.constant 1.000000e+00 : f32
    %26 = vector.broadcast %cst_7 : f32 to vector<16x128xf32>
    %27 = arith.addf %26, %25 : vector<16x128xf32>
    %28 = math.log %27 : vector<16x128xf32>
    %29 = arith.addf %20, %28 : vector<16x128xf32>
    %c1_i32 = arith.constant 1 : i32
    %30 = vector.broadcast %c1_i32 : i32 to vector<16x128xi32>
    %31 = arith.cmpi eq, %7, %30 : vector<16x128xi32>
    %c0_i32_8 = arith.constant 0 : i32
    %32 = vector.broadcast %c0_i32_8 : i32 to vector<16x128xi32>
    %33 = arith.cmpi eq, %7, %32 : vector<16x128xi32>
    %34 = arith.select %31, %6, %4 : vector<16x128xi1>, vector<16x128xf32>
    %35 = arith.subf %29, %34 : vector<16x128xf32>
    %36 = arith.mulf %35, %19 : vector<16x128xf32>
    %37 = arith.cmpf oge, %6, %4 : vector<16x128xf32>
    %38 = arith.andi %37, %33 : vector<16x128xi1>
    %39 = arith.andi %38, %17 : vector<16x128xi1>
    %cst_9 = arith.constant 1.000000e+00 : f32
    %cst_10 = arith.constant 0.000000e+00 : f32
    %40 = vector.broadcast %cst_9 : f32 to vector<16x128xf32>
    %41 = vector.broadcast %cst_10 : f32 to vector<16x128xf32>
    %42 = arith.select %39, %40, %41 : vector<16x128xi1>, vector<16x128xf32>
    %cst_11 = arith.constant dense<true> : vector<16x128xi1>
    %43 = arith.xori %37, %cst_11 : vector<16x128xi1>
    %44 = arith.andi %43, %31 : vector<16x128xi1>
    %45 = arith.andi %44, %17 : vector<16x128xi1>
    %cst_12 = arith.constant 1.000000e+00 : f32
    %cst_13 = arith.constant 0.000000e+00 : f32
    %46 = vector.broadcast %cst_12 : f32 to vector<16x128xf32>
    %47 = vector.broadcast %cst_13 : f32 to vector<16x128xf32>
    %48 = arith.select %45, %46, %47 : vector<16x128xi1>, vector<16x128xf32>
    %49 = arith.andi %31, %17 : vector<16x128xi1>
    %cst_14 = arith.constant 1.000000e+00 : f32
    %cst_15 = arith.constant 0.000000e+00 : f32
    %50 = vector.broadcast %cst_14 : f32 to vector<16x128xf32>
    %51 = vector.broadcast %cst_15 : f32 to vector<16x128xf32>
    %52 = arith.select %49, %50, %51 : vector<16x128xi1>, vector<16x128xf32>
    %c0_16 = arith.constant 0 : index
    %53 = memref.load %arg4[%c0_16] : memref<4xf32, #tpu.memory_space<smem>>
    %54 = vector.shape_cast %36 : vector<16x128xf32> to vector<1x16x128xf32>
    %cst_17 = arith.constant dense<0.000000e+00> : vector<1xf32>
    %55 = vector.multi_reduction <add>, %54, %cst_17 [1, 2] : vector<1x16x128xf32> to vector<1xf32>
    %56 = vector.shape_cast %55 : vector<1xf32> to vector<1x1x1xf32>
    %57 = vector.extract %56[0, 0, 0] : f32 from vector<1x1x1xf32>
    %58 = arith.addf %53, %57 : f32
    %c0_18 = arith.constant 0 : index
    %59 = memref.load %arg4[%c0_18] : memref<4xf32, #tpu.memory_space<smem>>
    memref.store %58, %arg4[%c0_18] : memref<4xf32, #tpu.memory_space<smem>>
    %c1_19 = arith.constant 1 : index
    %60 = memref.load %arg4[%c1_19] : memref<4xf32, #tpu.memory_space<smem>>
    %61 = vector.shape_cast %42 : vector<16x128xf32> to vector<1x16x128xf32>
    %cst_20 = arith.constant dense<0.000000e+00> : vector<1xf32>
    %62 = vector.multi_reduction <add>, %61, %cst_20 [1, 2] : vector<1x16x128xf32> to vector<1xf32>
    %63 = vector.shape_cast %62 : vector<1xf32> to vector<1x1x1xf32>
    %64 = vector.extract %63[0, 0, 0] : f32 from vector<1x1x1xf32>
    %65 = arith.addf %60, %64 : f32
    %c1_21 = arith.constant 1 : index
    %66 = memref.load %arg4[%c1_21] : memref<4xf32, #tpu.memory_space<smem>>
    memref.store %65, %arg4[%c1_21] : memref<4xf32, #tpu.memory_space<smem>>
    %c2 = arith.constant 2 : index
    %67 = memref.load %arg4[%c2] : memref<4xf32, #tpu.memory_space<smem>>
    %68 = vector.shape_cast %48 : vector<16x128xf32> to vector<1x16x128xf32>
    %cst_22 = arith.constant dense<0.000000e+00> : vector<1xf32>
    %69 = vector.multi_reduction <add>, %68, %cst_22 [1, 2] : vector<1x16x128xf32> to vector<1xf32>
    %70 = vector.shape_cast %69 : vector<1xf32> to vector<1x1x1xf32>
    %71 = vector.extract %70[0, 0, 0] : f32 from vector<1x1x1xf32>
    %72 = arith.addf %67, %71 : f32
    %c2_23 = arith.constant 2 : index
    %73 = memref.load %arg4[%c2_23] : memref<4xf32, #tpu.memory_space<smem>>
    memref.store %72, %arg4[%c2_23] : memref<4xf32, #tpu.memory_space<smem>>
    %c3 = arith.constant 3 : index
    %74 = memref.load %arg4[%c3] : memref<4xf32, #tpu.memory_space<smem>>
    %75 = vector.shape_cast %52 : vector<16x128xf32> to vector<1x16x128xf32>
    %cst_24 = arith.constant dense<0.000000e+00> : vector<1xf32>
    %76 = vector.multi_reduction <add>, %75, %cst_24 [1, 2] : vector<1x16x128xf32> to vector<1xf32>
    %77 = vector.shape_cast %76 : vector<1xf32> to vector<1x1x1xf32>
    %78 = vector.extract %77[0, 0, 0] : f32 from vector<1x1x1xf32>
    %79 = arith.addf %74, %78 : f32
    %c3_25 = arith.constant 3 : index
    %80 = memref.load %arg4[%c3_25] : memref<4xf32, #tpu.memory_space<smem>>
    memref.store %79, %arg4[%c3_25] : memref<4xf32, #tpu.memory_space<smem>>
    %c0_i32_26 = arith.constant 0 : i32
    %81 = arith.cmpi eq, %arg0, %c0_i32_26 : i32
    %82 = arith.extui %81 : i1 to i32
    %cst_27 = arith.constant 0.000000e+00 : f32
    %c0_i32_28 = arith.constant 0 : i32
    %83 = arith.cmpi ne, %82, %c0_i32_28 : i32
    scf.if %83 {
      %c0_29 = arith.constant 0 : index
      %84 = memref.load %arg4[%c0_29] : memref<4xf32, #tpu.memory_space<smem>>
      %cst_30 = arith.constant 2.000000e+03 : f32
      %85 = arith.divf %84, %cst_30 : f32
      %c1_31 = arith.constant 1 : index
      %86 = memref.load %arg4[%c1_31] : memref<4xf32, #tpu.memory_space<smem>>
      %c2_32 = arith.constant 2 : index
      %87 = memref.load %arg4[%c2_32] : memref<4xf32, #tpu.memory_space<smem>>
      %c3_33 = arith.constant 3 : index
      %88 = memref.load %arg4[%c3_33] : memref<4xf32, #tpu.memory_space<smem>>
      %cst_34 = arith.constant 2.000000e+03 : f32
      %89 = arith.subf %cst_34, %88 : f32
      %90 = arith.subf %89, %86 : f32
      %91 = arith.subf %88, %87 : f32
      %92 = arith.addf %86, %90 : f32
      %cst_35 = arith.constant 9.99999993E-9 : f32
      %93 = arith.addf %92, %cst_35 : f32
      %94 = arith.divf %86, %93 : f32
      %95 = arith.addf %87, %91 : f32
      %cst_36 = arith.constant 9.99999993E-9 : f32
      %96 = arith.addf %95, %cst_36 : f32
      %97 = arith.divf %87, %96 : f32
      %cst_37 = arith.constant 0.00999999977 : f32
      %98 = arith.subf %94, %cst_37 : f32
      %99 = arith.maximumf %98, %cst_27 : f32
      %cst_38 = arith.constant 1.000000e+00 : f32
      %100 = arith.mulf %cst_38, %99 : f32
      %cst_39 = arith.constant 0.00999999977 : f32
      %101 = arith.subf %97, %cst_39 : f32
      %102 = arith.maximumf %101, %cst_27 : f32
      %cst_40 = arith.constant 1.000000e+00 : f32
      %103 = arith.mulf %cst_40, %102 : f32
      %104 = arith.addf %85, %100 : f32
      %105 = arith.addf %104, %103 : f32
      %c0_41 = arith.constant 0 : index
      %c0_42 = arith.constant 0 : index
      %106 = memref.load %arg3[%c0_41, %c0_42] : memref<1x1xf32, #tpu.memory_space<smem>>
      memref.store %105, %arg3[%c0_41, %c0_42] : memref<1x1xf32, #tpu.memory_space<smem>>
    } else {
    }
    return
  }
  func.func @transform_0(%arg0: i32) -> (i32, i32, i32) {
    %c0_i32 = arith.constant 0 : i32
    %c0_i32_0 = arith.constant 0 : i32
    %c0_i32_1 = arith.constant 0 : i32
    return %c0_i32, %arg0, %c0_i32_0 : i32, i32, i32
  }
  func.func @transform_1(%arg0: i32) -> (i32, i32) {
    %c0_i32 = arith.constant 0 : i32
    %c0_i32_0 = arith.constant 0 : i32
    return %arg0, %c0_i32 : i32, i32
  }
  func.func @transform_2(%arg0: i32) -> (i32, i32) {
    %c0_i32 = arith.constant 0 : i32
    %c0_i32_0 = arith.constant 0 : i32
    %c0_i32_1 = arith.constant 0 : i32
    return %c0_i32, %c0_i32_0 : i32, i32
  }
}

</mosaic_0001>

<bundles_post_ra>
// kernel: tpu_custom_call.1
= control target key start
LH: loop header
LB: loop body
LE: loop exit
PB: predicated region body
PF: predicated region fallthrough
CT: control target
= control target key end

     0   :  { %7 = vsyncpa [#allocation4], 0  ;;  %s388_s0 = inlined_call_operand.hbm [shape: f32[2,16,128], index: 0, kind: input, shape index: {}]   ;;  %s389_s1 = inlined_call_operand.hbm [shape: s32[16,128], index: 1, kind: input, shape index: {}]   ;;  %s390_s2 = inlined_call_operand.hbm [shape: f32[1,1], index: 2, kind: output, shape index: {}]  }
   0x1   :  { %8 = vsyncpa [#allocation7], 0 }
   0x2   :  { %9 = vsyncpa [#allocation5], 0  ;;  %s328_s9 = smov [#allocation3]  }
   0x3   :  { %s15_s10 = sshll.u32 %s328_s9, 4  ;;  %s16_s10 = int_to_ptr.vmem [resolvable:$true] %s15_s10 }
   0x4   :  { %s282_s11 = scalar_lea.vmem %s16_s10, 512  ;;  %p287_p1 = scmp.lt.s32.totalorder %s16_s10, %s16_s10 }
   0x5   :  { %p283_p0 = scmp.ne.s32.totalorder %s16_s10, %s282_s11  ;;  %p288_p2 = scmp.lt.s32.totalorder %s282_s11, %s282_s11 }
   0x7   :  { %p289_p3 = por %p288_p2, %p287_p1 }
   0x9   :  { %p290_p4 = pnand %p289_p3, %p283_p0 }
   0xb   :  { %293 = shalt.err (!%p290_p4)
}
   0xc   :  { %s329_s12 = smov 128   ;;  %s330_s13 = smov 8  }
   0xd   :  { %21 = dma.hbm_to_vmem [thread:$0]  %s388_s0, 512, %s16_s10, [#allocation4], %s329_s12, %s329_s12, %s330_s13  }
   0xe   :  { %s331_s16 = smov [#allocation6]  }
   0xf   :  { %s27_s17 = sshll.u32 %s331_s16, 4  ;;  %s28_s17 = int_to_ptr.vmem [resolvable:$true] %s27_s17 }
  0x10   :  { %s302_s18 = scalar_lea.vmem %s28_s17, 256  ;;  %p307_p6 = scmp.lt.s32.totalorder %s28_s17, %s28_s17 }
  0x11   :  { %p303_p5 = scmp.ne.s32.totalorder %s28_s17, %s302_s18  ;;  %p308_p7 = scmp.lt.s32.totalorder %s302_s18, %s302_s18 }
  0x13   :  { %p309_p8 = por %p308_p7, %p307_p6 }
  0x15   :  { %p310_p9 = pnand %p309_p8, %p303_p5 }
  0x17   :  { %313 = shalt.err (!%p310_p9)
}
  0x18   :  { %33 = dma.hbm_to_vmem [thread:$0]  %s389_s1, 256, %s28_s17, [#allocation7], %s329_s12, %s329_s12, %s330_s13  }
  0x19   :  { %322 = dma.done.wait [#allocation4], 512  }
  0x1a   :  { %323 = vsyncadd [#allocation4], 4294966784 }
  0x1b   :  { %324 = dma.done.wait [#allocation7], 256  }
  0x1c   :  { %325 = vsyncadd [#allocation7], 4294967040  ;;  %v59_v0 = vlaneseq  ;;  %v52_v7 = vld [vmem:[#allocation3] sm:$0xff]  ;;  %v53_v8 = vld [vmem:[#allocation3 + $0x8] sm:$0xff]  ;;  %vm332_vm4 = vmmov 1   ;;  %v333_v20 = vmov 0.0  }
  0x1d   :  { %v55_v9 = vld [vmem:[#allocation3 + $0x10] sm:$0xff]  ;;  %v56_v10 = vld [vmem:[#allocation3 + $0x18] sm:$0xff]  ;;  %v57_v11 = vld [vmem:[#allocation6] sm:$0xff]  ;;  %s334_s9 = smov 0.0   ;;  %s335_s14 = smov [#allocation8]  }
  0x1e   :  { %v60_v1 = vshrl.u32 %v59_v0, 7  ;;  %v63_v2 = vand.u32 127, %v59_v0  ;;  %v58_v12 = vld [vmem:[#allocation6 + $0x8] sm:$0xff]  ;;  %vm108_vm0 = vcmp.ge.f32.partialorder %v55_v9, %v52_v7  ;;  %v80_v14 = vsub.f32 %v55_v9, %v52_v7 }
  0x1f   :  { %v81_v15 = vsub.f32 %v56_v10, %v53_v8  ;;  %vm98_vm1 = vcmp.eq.s32.totalorder %v57_v11, 1  ;;  %vm99_vm2 = vcmp.eq.s32.totalorder %v58_v12, 1  ;;  %vm109_vm3 = vcmp.ge.f32.partialorder %v56_v10, %v53_v8  ;;  %vm116_vm5 = vmxor %vm108_vm0, %vm332_vm4 }
  0x20   :  { %v61_v3 = vadd.s32 8, %v60_v1  ;;  %v68_v4 = vmul.u32 128, %v60_v1  ;;  %vm117_vm7 = vmxor %vm109_vm3, %vm332_vm4  ;;  %v82_v16 = vand.u32 2147483647, %v80_v14  ;;  %v78_v33 = vmax.f32 %v52_v7, %v55_v9 }
  0x21   :  { %v83_v17 = vand.u32 2147483647, %v81_v15  ;;  %vm118_vm9 = vmand %vm116_vm5, %vm98_vm1  ;;  %vm100_vm15 = vcmp.eq.s32.totalorder %v57_v11, 0  ;;  %v79_v35 = vmax.f32 %v53_v8, %v56_v10  ;;  %vm101_vm4 = vcmp.eq.s32.totalorder %v58_v12, 0 }
  0x22   :  { %v69_v5 = vmul.u32 128, %v61_v3  ;;  %v357_v6 = vadd.s32 %v68_v4, %v63_v2  ;;  %vm119_vm10 = vmand %vm117_vm7, %vm99_vm2  ;;  %v84_v18 = vsub.f32 0.0, %v82_v16  ;;  %v102_v39 = vsel %vm98_vm1, %v55_v9, %v52_v7 }
  0x23   :  { %v85_v19 = vsub.f32 0.0, %v83_v17  ;;  %vm110_vm5 = vmand %vm108_vm0, %vm100_vm15  ;;  %v103_v41 = vsel %vm99_vm2, %v56_v10, %v53_v8 }
  0x24   :  { %v71_v13 = vadd.s32 %v69_v5, %v63_v2  ;;  %vm72_vm6 = vcmp.lt.s32.totalorder %v357_v6, 2000  ;;  %v86_v22 = vmul.f32 1.442695, %v84_v18  ;;  %vm111_vm7 = vmand %vm109_vm3, %vm101_vm4 }
  0x25   :  { %vm120_vm11 = vmand %vm118_vm9, %vm72_vm6  ;;  %v88_v23 = vmul.f32 1.442695, %v85_v19  ;;  %v232_v42 = vsel %vm72_vm6, 1.0, %v333_v20 }
  0x26   :  { %vm73_vm8 = vcmp.lt.s32.totalorder %v71_v13, 2000  ;;  %v122_v21 = vsel %vm120_vm11, 1.0, %v333_v20  ;;  %vm124_vm13 = vmand %vm98_vm1, %vm72_vm6  ;;  %262 = vpow2.f32 %v86_v22 }
  0x27   :  { %vm121_vm12 = vmand %vm119_vm10, %vm73_vm8  ;;  %v126_v26 = vsel %vm124_vm13, 1.0, %v333_v20  ;;  %264 = vpow2.f32 %v88_v23  ;;  %v233_v44 = vsel %vm73_vm8, 1.0, %v333_v20 }
  0x28   :  { %v123_v24 = vsel %vm121_vm12, 1.0, %v333_v20  ;;  %vm125_vm14 = vmand %vm99_vm2, %vm73_vm8 }
  0x29   :  { %v157_v25 = vadd.f32 %v123_v24, %v122_v21  ;;  %v127_v27 = vsel %vm125_vm14, 1.0, %v333_v20  ;;  %vm112_vm9 = vmand %vm110_vm5, %vm72_vm6 }
  0x2a   :  { %v171_v28 = vadd.f32 %v127_v27, %v126_v26  ;;  %vm113_vm1 = vmand %vm111_vm7, %vm73_vm8  ;;  %v114_v49 = vsel %vm112_vm9, 1.0, %v333_v20 }
  0x2b   :  { %158 = vadd.xlane.f32.xlu1 %v157_v25  ;;  %v115_v50 = vsel %vm113_vm1, 1.0, %v333_v20 }
  0x2c   :  { %v143_v52 = vadd.f32 %v115_v50, %v114_v49 }
  0x2f   :  { %172 = vadd.xlane.f32.xlu1 %v171_v28 }
  0x33   :  { %v263_v29 = vpop.eup %262 }
  0x34   :  { %v265_v30 = vpop.eup %264  ;;  %v90_v31 = vadd.f32 1.0, %v263_v29 }
  0x35   :  { %v91_v32 = vadd.f32 1.0, %v265_v30 }
  0x36   :  { %266 = vlog2.f32 %v90_v31 }
  0x37   :  { %268 = vlog2.f32 %v91_v32 }
  0x43   :  { %v267_v34 = vpop.eup %266 }
  0x44   :  { %v269_v36 = vpop.eup %268  ;;  %v93_v37 = vmul.f32 0.6931472, %v267_v34 }
  0x45   :  { %v95_v38 = vmul.f32 0.6931472, %v269_v36 }
  0x46   :  { %v96_v40 = vadd.f32 %v93_v37, %v78_v33 }
  0x47   :  { %v97_v43 = vadd.f32 %v95_v38, %v79_v35 }
  0x48   :  { %v104_v45 = vsub.f32 %v96_v40, %v102_v39 }
  0x49   :  { %v105_v46 = vsub.f32 %v97_v43, %v103_v41 }
  0x4a   :  { %v106_v47 = vmul.f32 %v232_v42, %v104_v45 }
  0x4b   :  { %v107_v48 = vmul.f32 %v233_v44, %v105_v46 }
  0x4d   :  { %v129_v51 = vadd.f32 %v107_v48, %v106_v47 }
  0x4f   :  { %130 = vadd.xlane.f32.xlu0 %v129_v51 }
  0x53   :  { %144 = vadd.xlane.f32.xlu0 %v143_v52 }
  0xb4   :  { %v159_v53 = vpop.xlane.xlu1 %158 }
  0xb5   :  { %v160_v55 = vrot.slane %v159_v53, 4 }
  0xb7   :  { %v161_v57 = vadd.f32 %v160_v55, %v159_v53 }
  0xb8   :  { %v173_v54 = vpop.xlane.xlu1 %172 }
  0xb9   :  { %v174_v56 = vrot.slane %v173_v54, 4  ;;  %v162_v62 = vrot.slane %v161_v57, 2 }
  0xbb   :  { %v175_v59 = vadd.f32 %v174_v56, %v173_v54  ;;  %v163_v5 = vadd.f32 %v162_v62, %v161_v57 }
  0xbd   :  { %v176_v0 = vrot.slane %v175_v59, 2  ;;  %v164_v11 = vrot.slane %v163_v5, 1 }
  0xbf   :  { %v177_v6 = vadd.f32 %v176_v0, %v175_v59  ;;  %v165_v15 = vadd.f32 %v164_v11, %v163_v5 }
  0xc1   :  { %v178_v13 = vrot.slane %v177_v6, 1 }
  0xc3   :  { %v179_v16 = vadd.f32 %v178_v13, %v177_v6 }
  0xd8   :  { %v131_v58 = vpop.xlane.xlu0 %130 }
  0xd9   :  { %v132_v60 = vrot.slane %v131_v58, 4 }
  0xdb   :  { %v133_v61 = vadd.f32 %v132_v60, %v131_v58 }
  0xdc   :  { %v145_v63 = vpop.xlane.xlu0 %144 }
  0xdd   :  { %v134_v1 = vrot.slane %v133_v61, 2  ;;  %v146_v2 = vrot.slane %v145_v63, 4 }
  0xdf   :  { %v147_v3 = vadd.f32 %v146_v2, %v145_v63  ;;  %v135_v4 = vadd.f32 %v134_v1, %v133_v61 }
  0xe1   :  { %v148_v7 = vrot.slane %v147_v3, 2  ;;  %v136_v8 = vrot.slane %v135_v4, 1 }
  0xe3   :  { %v149_v9 = vadd.f32 %v148_v7, %v147_v3  ;;  %v137_v10 = vadd.f32 %v136_v8, %v135_v4 }
  0xe5   :  { %242 = vpush %v137_v10  ;;  %v150_v12 = vrot.slane %v149_v9, 1 }
  0xe7   :  { %v151_v14 = vadd.f32 %v150_v12, %v149_v9 }
  0xe9   :  { %244 = vpush %v151_v14 }
  0xea   :  { %246 = vpush %v165_v15 }
  0xeb   :  { %248 = vpush %v179_v16 }
 0x116   :  { %s382_s0 = spop %242 }
 0x117   :  { %s190_s7 = smul.f32 0.0005, %s382_s0 }
 0x11a   :  { %s245_s1 = spop %244 }
 0x11b   :  { %s247_s21 = spop %246 }
 0x11c   :  { %s249_s22 = spop %248 }
 0x11d   :  { %s194_s23 = ssub.f32 2000.0, %s249_s22 }
 0x11e   :  { %s196_s24 = ssub.f32 %s249_s22, %s247_s21 }
 0x11f   :  { %s195_s25 = ssub.f32 %s194_s23, %s245_s1 }
 0x120   :  { %s203_s26 = sadd.f32 %s247_s21, %s196_s24 }
 0x121   :  { %s197_s27 = sadd.f32 %s245_s1, %s195_s25 }
 0x122   :  { %s204_s28 = sadd.f32 1e-08, %s203_s26 }
 0x123   :  { %s198_s29 = sadd.f32 1e-08, %s197_s27 }
 0x124   :  { %v205_v17 = vstv %s204_s28 }
 0x125   :  { %v199_v18 = vstv %s198_s29 }
 0x126   :  { %270 = vrcp.f32 %v199_v18 }
 0x127   :  { %272 = vrcp.f32 %v205_v17 }
 0x133   :  { %v271_v19 = vpop.eup %270 }
 0x134   :  { %v273_v20 = vpop.eup %272  ;;  %250 = vpush %v271_v19 }
 0x135   :  { %252 = vpush %v273_v20 }
 0x165   :  { %s251_s30 = spop %250 }
 0x166   :  { %s202_s3 = smul.f32 %s251_s30, %s245_s1  ;;  %s253_s4 = spop %252 }
 0x167   :  { %s208_s5 = smul.f32 %s253_s4, %s247_s21 }
 0x168   :  { %s240_s6 = sadd.f32 -0.01, %s202_s3 }
 0x169   :  { %s241_s8 = sadd.f32 -0.01, %s208_s5 }
 0x16a   :  { %s210_s10 = smax.f32 %s334_s9, %s240_s6 }
 0x16b   :  { %s213_s11 = sadd.f32 %s210_s10, %s190_s7  ;;  %s212_s12 = smax.f32 %s334_s9, %s241_s8 }
 0x16d   :  { %s214_s13 = sadd.f32 %s213_s11, %s212_s12 }
 0x16f   :  { %216 = sst [smem:[#allocation8]] %s214_s13 }
 0x170   :  { %224 = dma.smem_to_hbm %s335_s14, 16, %s390_s2, [#allocation5]  }
 0x171   :  { %326 = dma.done.wait [#allocation5], 16  }
 0x172   :  { %327 = vsyncadd [#allocation5], 4294967280 }
 0x173   :  { %228 = sfence }
 0x174   :  { %229 = vsyncpa [#allocation4], 1 }
 0x175   :  { %230 = vsyncpa [#allocation7], 1 }
 0x176   :  { %231 = vsyncpa [#allocation5], 1 }

</bundles_post_ra>
